<compile_context>
chip_gen: v7x
topology: tpu7x:2x2x1
jax: 0.10.0
libtpu: 0.0.40
codegen_flags: <defaults>
</compile_context>

<pallas_src>
import jax
import jax.numpy as jnp
from jax.experimental import pallas as pl
from jax.experimental.pallas import tpu as pltpu


def _round_up(n, m):
    return ((n + m - 1) // m) * m


def _hypernet_kernel(t_ref, x_ref, w0_ref, wh_ref, wo_ref, b_ref, out_ref):
    """One batch tile of the HyperNetwork1 forward pass.

    t_ref  : (1, 1)               f32  SMEM scalar time
    x_ref  : (TM, D)              f32  batch tile of inputs
    w0_ref : (D + 1, H)           bf16 first-layer weight (x-rows first, t-row last)
    wh_ref : (max(1,NH-1), H, H)  bf16 stacked hidden weights
    wo_ref : (H, OUT_PAD)         bf16 output weight, zero-padded to 128 lanes
    b_ref  : (NH + 1, OUT_PAD)    f32  stacked biases (hidden biases in [:, :H])
    out_ref: (TM, OUT_PAD)        f32  lane-dense output slab
    """
    n_hiddens = b_ref.shape[0] - 1          # static Python ints at trace time
    H = w0_ref.shape[1]
    D = w0_ref.shape[0] - 1
    out_pad = wo_ref.shape[1]

    t = t_ref[0, 0]                          # scalar f32 from SMEM
    x = x_ref[...].astype(jnp.bfloat16)      # (TM, D)  bf16 MXU operand

    # First layer: Linear(D + 1, H) on concat([t, x]) == x @ W0_x + t * W0_t + b0.
    w0_x = w0_ref[0:D, :]                    # (D, H)  bf16
    w0_t = w0_ref[D:D + 1, :].astype(jnp.float32)   # (1, H)  f32
    h = jnp.dot(x, w0_x, preferred_element_type=jnp.float32)
    h = jnp.tanh(h + t * w0_t + b_ref[0:1, :H])

    # Hidden layers: Linear(H, H) + Tanh (static unroll, weights indexed statically).
    for li in range(n_hiddens - 1):
        w = wh_ref[li]                       # (H, H) bf16
        b = b_ref[li + 1:li + 2, :H]         # (1, H) f32
        h = jnp.tanh(
            jnp.dot(h.astype(jnp.bfloat16), w, preferred_element_type=jnp.float32) + b)

    # Output layer: Linear(H, D) — lane-padded to OUT_PAD, no activation.
    y = jnp.dot(h.astype(jnp.bfloat16), wo_ref[...],
                preferred_element_type=jnp.float32)
    out_ref[...] = (y + b_ref[n_hiddens:n_hiddens + 1, :out_pad]).astype(out_ref.dtype)


def pack_params(params, weight_dtype=jnp.bfloat16):
    """Pack per-layer (W, b) params (W stored as (in, out)) into 4 kernel arrays."""
    n_layers = len(params)                   # n_hiddens + 1
    n_hiddens = n_layers - 1
    w0_raw, _ = params[0]                    # (D + 1, H)
    H = w0_raw.shape[1]
    w_out_raw, b_out = params[-1]            # (H, D_out), (D_out,)
    D_out = w_out_raw.shape[1]
    out_pad = max(_round_up(max(D_out, 1), 128), _round_up(H, 128))

    # First-layer weight reordered: x rows first, t row last.
    w0 = jnp.concatenate([w0_raw[1:, :], w0_raw[0:1, :]], axis=0).astype(weight_dtype)

    if n_hiddens > 1:
        wh = jnp.stack([params[i][0] for i in range(1, n_hiddens)], axis=0)
        wh = wh.astype(weight_dtype)
    else:
        wh = jnp.zeros((1, H, H), weight_dtype)   # dummy, unused

    wo = jnp.zeros((H, out_pad), weight_dtype).at[:, :D_out].set(
        w_out_raw.astype(weight_dtype))

    b = jnp.zeros((n_hiddens + 1, out_pad), jnp.float32)
    for i in range(n_hiddens):
        b = b.at[i, :H].set(params[i][1])
    b = b.at[n_hiddens, :D_out].set(b_out)
    return w0, wh, wo, b


def hypernetwork1_forward(t, x, packed, *, block_m=256):
    """Batched forward: x is (B, in_out_dim) f32, packed = pack_params(...)."""
    w0, wh, wo, b = packed
    B, D = x.shape
    out_pad = wo.shape[1]

    # Batch tile sized for the MXU (capped at block_m), batch padded to a multiple.
    tm = min(block_m, _round_up(B, 8))
    B_pad = _round_up(B, tm)
    if B_pad != B:
        x = jnp.pad(x, ((0, B_pad - B), (0, 0)))
    t_arr = jnp.full((1, 1), t, dtype=jnp.float32)

    grid = (B_pad // tm,)
    out = pl.pallas_call(
        _hypernet_kernel,
        out_shape=jax.ShapeDtypeStruct((B_pad, out_pad), jnp.float32),
        grid=grid,
        in_specs=[
            pl.BlockSpec((1, 1), lambda i: (0, 0), memory_space=pltpu.SMEM),  # t
            pl.BlockSpec((tm, D), lambda i: (i, 0)),                          # x tile
            pl.BlockSpec(w0.shape, lambda i: (0, 0)),                         # W0 (resident)
            pl.BlockSpec(wh.shape, lambda i: (0, 0, 0)),                      # hidden Ws
            pl.BlockSpec(wo.shape, lambda i: (0, 0)),                         # W_out (padded)
            pl.BlockSpec(b.shape, lambda i: (0, 0)),                          # biases
        ],
        out_specs=pl.BlockSpec((tm, out_pad), lambda i: (i, 0)),
        compiler_params=pltpu.CompilerParams(
            dimension_semantics=("parallel",)),
    )(t_arr, x, w0, wh, wo, b)
    return out[:B, :D]


def init_params(key, in_out_dim, hidden_dim, n_hiddens):
    """Deterministic synthetic init matching HyperNetwork1 layer shapes.

    Returns a list of (W, b) with W stored as (in_dim, out_dim) so that the
    forward pass is h = h @ W + b (i.e. W = torch_linear.weight.T).
    """
    layers = [in_out_dim + 1] + [hidden_dim] * n_hiddens + [in_out_dim]
    params = []
    keys = jax.random.split(key, 2 * (len(layers) - 1))
    for li in range(len(layers) - 1):
        fan_in, fan_out = layers[li], layers[li + 1]
        w = 0.1 * jax.random.normal(keys[2 * li], (fan_in, fan_out), jnp.float32)
        b = 0.1 * jax.random.normal(keys[2 * li + 1], (fan_out,), jnp.float32)
        params.append((w, b))
    return params


def reference_forward(t, x, params):
    """Plain-JAX f32 replica of HyperNetwork1.forward for correctness checking."""
    batch = x.shape[0]
    n_hiddens = len(params) - 1
    state = jnp.concatenate(
        [jnp.full((batch, 1), t, dtype=jnp.float32), x], axis=1)
    h = state
    for li in range(n_hiddens):
        w, b = params[li]
        h = jnp.tanh(h @ w + b)
    w, b = params[n_hiddens]
    return h @ w + b


if __name__ == "__main__":
    in_out_dim = 4
    hidden_dim = 32
    n_hiddens = 2
    batch = 64
    t = 0.5

    key = jax.random.PRNGKey(0)
    k_params, k_x = jax.random.split(key)
    params = init_params(k_params, in_out_dim, hidden_dim, n_hiddens)
    packed = pack_params(params)
    x = jax.random.normal(k_x, (batch, in_out_dim), jnp.float32)

    # Small batch tile here just to exercise the multi-step grid path (grid=(2,));
    # for production batches leave block_m at its MXU-sized default of 256.
    out = hypernetwork1_forward(t, x, packed, block_m=32)
    out = jax.block_until_ready(out)

    ref = reference_forward(t, x, params)
    assert out.shape == (batch, in_out_dim)
    # bf16 MXU operands vs. pure-f32 reference -> modest tolerance.
    assert jnp.allclose(out, ref, atol=3e-2, rtol=3e-2), float(
        jnp.max(jnp.abs(out - ref)))

    print("KERNEL_OK")
</pallas_src>

<mosaic_0001>
module attributes {stable_mosaic.version = 11 : i64} {
  func.func @_hypernet_kernel(%arg0: i32, %arg1: memref<1x1xf32, #tpu.memory_space<smem>>, %arg2: memref<32x4xf32, #tpu.memory_space<vmem>>, %arg3: memref<5x32xbf16, #tpu.memory_space<vmem>>, %arg4: memref<1x32x32xbf16, #tpu.memory_space<vmem>>, %arg5: memref<32x128xbf16, #tpu.memory_space<vmem>>, %arg6: memref<3x128xf32, #tpu.memory_space<vmem>>, %arg7: memref<32x128xf32, #tpu.memory_space<vmem>>) attributes {dimension_semantics = [#tpu.dimension_semantics<parallel>], iteration_bounds = array<i64: 2>, scalar_prefetch = 0 : i64, scratch_operands = 0 : i64, tpu.core_type = #tpu.core_type<tc>, window_params = [{transform_indices = @transform_0, window_bounds = array<i64: 1, 1>}, {transform_indices = @transform_1, window_bounds = array<i64: 32, 4>}, {pipeline_mode = #tpu.pipeline_mode<synchronous>, transform_indices = @transform_2, window_bounds = array<i64: 5, 32>}, {pipeline_mode = #tpu.pipeline_mode<synchronous>, transform_indices = @transform_3, window_bounds = array<i64: 1, 32, 32>}, {pipeline_mode = #tpu.pipeline_mode<synchronous>, transform_indices = @transform_4, window_bounds = array<i64: 32, 128>}, {pipeline_mode = #tpu.pipeline_mode<synchronous>, transform_indices = @transform_5, window_bounds = array<i64: 3, 128>}, {transform_indices = @transform_6, window_bounds = array<i64: 32, 128>}]} {
    %c0 = arith.constant 0 : index
    %c0_0 = arith.constant 0 : index
    %0 = memref.load %arg1[%c0, %c0_0] : memref<1x1xf32, #tpu.memory_space<smem>>
    %c0_1 = arith.constant 0 : index
    %c0_2 = arith.constant 0 : index
    %1 = vector.load %arg2[%c0_1, %c0_2] : memref<32x4xf32, #tpu.memory_space<vmem>>, vector<32x4xf32>
    %2 = arith.truncf %1 : vector<32x4xf32> to vector<32x4xbf16>
    %c0_3 = arith.constant 0 : index
    %c0_4 = arith.constant 0 : index
    %3 = vector.load %arg3[%c0_3, %c0_4] : memref<5x32xbf16, #tpu.memory_space<vmem>>, vector<4x32xbf16>
    %c4 = arith.constant 4 : index
    %c0_5 = arith.constant 0 : index
    %4 = vector.load %arg3[%c4, %c0_5] : memref<5x32xbf16, #tpu.memory_space<vmem>>, vector<1x32xbf16>
    %5 = arith.extf %4 : vector<1x32xbf16> to vector<1x32xf32>
    %cst = arith.constant dense<0.000000e+00> : vector<32x32xf32>
    %6 = tpu.matmul %2, %3, %cst {dimension_numbers = #tpu.dot_dimension_numbers<[1], [0], [0], [1], [0, 0, 1, 1], [], []>} : vector<32x4xbf16>, vector<4x32xbf16>, vector<32x32xf32> -> vector<32x32xf32>
    %7 = vector.broadcast %0 : f32 to vector<1x32xf32>
    %8 = arith.mulf %7, %5 : vector<1x32xf32>
    %9 = vector.broadcast %8 : vector<1x32xf32> to vector<32x32xf32>
    %10 = arith.addf %6, %9 : vector<32x32xf32>
    %c0_6 = arith.constant 0 : index
    %c0_7 = arith.constant 0 : index
    %11 = vector.load %arg6[%c0_6, %c0_7] : memref<3x128xf32, #tpu.memory_space<vmem>>, vector<1x32xf32>
    %12 = vector.broadcast %11 : vector<1x32xf32> to vector<32x32xf32>
    %13 = arith.addf %10, %12 : vector<32x32xf32>
    %14 = math.tanh %13 : vector<32x32xf32>
    %c0_8 = arith.constant 0 : index
    %c0_9 = arith.constant 0 : index
    %c0_10 = arith.constant 0 : index
    %15 = vector.load %arg4[%c0_8, %c0_9, %c0_10] : memref<1x32x32xbf16, #tpu.memory_space<vmem>>, vector<1x32x32xbf16>
    %16 = vector.shape_cast %15 : vector<1x32x32xbf16> to vector<32x32xbf16>
    %c1 = arith.constant 1 : index
    %c0_11 = arith.constant 0 : index
    %17 = vector.load %arg6[%c1, %c0_11] : memref<3x128xf32, #tpu.memory_space<vmem>>, vector<1x32xf32>
    %18 = arith.truncf %14 : vector<32x32xf32> to vector<32x32xbf16>
    %cst_12 = arith.constant dense<0.000000e+00> : vector<32x32xf32>
    %19 = tpu.matmul %18, %16, %cst_12 {dimension_numbers = #tpu.dot_dimension_numbers<[1], [0], [0], [1], [0, 0, 1, 1], [], []>} : vector<32x32xbf16>, vector<32x32xbf16>, vector<32x32xf32> -> vector<32x32xf32>
    %20 = vector.broadcast %17 : vector<1x32xf32> to vector<32x32xf32>
    %21 = arith.addf %19, %20 : vector<32x32xf32>
    %22 = math.tanh %21 : vector<32x32xf32>
    %23 = arith.truncf %22 : vector<32x32xf32> to vector<32x32xbf16>
    %c0_13 = arith.constant 0 : index
    %c0_14 = arith.constant 0 : index
    %24 = vector.load %arg5[%c0_13, %c0_14] : memref<32x128xbf16, #tpu.memory_space<vmem>>, vector<32x128xbf16>
    %cst_15 = arith.constant dense<0.000000e+00> : vector<32x128xf32>
    %25 = tpu.matmul %23, %24, %cst_15 {dimension_numbers = #tpu.dot_dimension_numbers<[1], [0], [0], [1], [0, 0, 1, 1], [], []>} : vector<32x32xbf16>, vector<32x128xbf16>, vector<32x128xf32> -> vector<32x128xf32>
    %c2 = arith.constant 2 : index
    %c0_16 = arith.constant 0 : index
    %26 = vector.load %arg6[%c2, %c0_16] : memref<3x128xf32, #tpu.memory_space<vmem>>, vector<1x128xf32>
    %27 = vector.broadcast %26 : vector<1x128xf32> to vector<32x128xf32>
    %28 = arith.addf %25, %27 : vector<32x128xf32>
    %c0_17 = arith.constant 0 : index
    %c0_18 = arith.constant 0 : index
    %29 = vector.load %arg7[%c0_17, %c0_18] : memref<32x128xf32, #tpu.memory_space<vmem>>, vector<32x128xf32>
    tpu.vector_store %arg7[%c0_17, %c0_18], %28 {strides = array<i32>} : memref<32x128xf32, #tpu.memory_space<vmem>>, vector<32x128xf32>,
    return
  }
  func.func @transform_0(%arg0: i32) -> (i32, i32) {
    %c0_i32 = arith.constant 0 : i32
    %c0_i32_0 = arith.constant 0 : i32
    %c0_i32_1 = arith.constant 0 : i32
    return %c0_i32, %c0_i32_0 : i32, i32
  }
  func.func @transform_1(%arg0: i32) -> (i32, i32) {
    %c0_i32 = arith.constant 0 : i32
    %c0_i32_0 = arith.constant 0 : i32
    return %arg0, %c0_i32 : i32, i32
  }
  func.func @transform_2(%arg0: i32) -> (i32, i32) {
    %c0_i32 = arith.constant 0 : i32
    %c0_i32_0 = arith.constant 0 : i32
    %c0_i32_1 = arith.constant 0 : i32
    return %c0_i32, %c0_i32_0 : i32, i32
  }
  func.func @transform_3(%arg0: i32) -> (i32, i32, i32) {
    %c0_i32 = arith.constant 0 : i32
    %c0_i32_0 = arith.constant 0 : i32
    %c0_i32_1 = arith.constant 0 : i32
    %c0_i32_2 = arith.constant 0 : i32
    return %c0_i32, %c0_i32_0, %c0_i32_1 : i32, i32, i32
  }
  func.func @transform_4(%arg0: i32) -> (i32, i32) {
    %c0_i32 = arith.constant 0 : i32
    %c0_i32_0 = arith.constant 0 : i32
    %c0_i32_1 = arith.constant 0 : i32
    return %c0_i32, %c0_i32_0 : i32, i32
  }
  func.func @transform_5(%arg0: i32) -> (i32, i32) {
    %c0_i32 = arith.constant 0 : i32
    %c0_i32_0 = arith.constant 0 : i32
    %c0_i32_1 = arith.constant 0 : i32
    return %c0_i32, %c0_i32_0 : i32, i32
  }
  func.func @transform_6(%arg0: i32) -> (i32, i32) {
    %c0_i32 = arith.constant 0 : i32
    %c0_i32_0 = arith.constant 0 : i32
    return %arg0, %c0_i32 : i32, i32
  }
}

</mosaic_0001>

<bundles_post_ra>
// kernel: tpu_custom_call.1
= control target key start
LH: loop header
LB: loop body
LE: loop exit
PB: predicated region body
PF: predicated region fallthrough
CT: control target
= control target key end

     0   :  { %s944_s0 = inlined_call_operand.<no memory space> [shape: f32[1,1], index: 0, kind: input, shape index: {}]   ;;  %s945_s1 = inlined_call_operand.vmem [shape: f32[64,4], index: 1, kind: input, shape index: {}]   ;;  %s946_s2 = inlined_call_operand.vmem [shape: bf16[5,32], index: 2, kind: input, shape index: {}]   ;;  %s947_s3 = inlined_call_operand.vmem [shape: bf16[1,32,32], index: 3, kind: input, shape index: {}]   ;;  %s948_s4 = inlined_call_operand.vmem [shape: bf16[32,128], index: 4, kind: input, shape index: {}]   ;;  %s949_s5 = inlined_call_operand.vmem [shape: f32[3,128], index: 5, kind: input, shape index: {}]   ;;  %s950_s6 = inlined_call_operand.hbm [shape: f32[64,128], index: 6, kind: output, shape index: {}]  }
   0x1   :  { %11 = sst [smem:[#allocation2]] %s944_s0 }
   0x2   :  { %12 = vsyncpa [#allocation4], 0 }
   0x3   :  { %14 = vsyncpa [#allocation4 + $0x1], 0  ;;  %s811_s23 = smov 0   ;;  %s813_s24 = smov 0  }
   0x4   :  { %s815_s25 = smov 0   ;;  %s817_s26 = smov 0  }
   0x5 LB: > { %s832_s0 = sadd.s32 4294967295, %s768_s26   ;;  %s585_s27 = sadd.s32 4294967294, %s768_s26   ;;  %s768_s26 = sphi %s817_s26, %s956_s26   ;;  %s764_s25 = sphi %s815_s25, %s955_s25   ;;  %s760_s24 = sphi %s813_s24, %s954_s24   ;;  %s756_s23 = sphi %s811_s23, %s953_s23  }
   0x6   : > { %s836_s28 = sadd.s32 1, %s768_s26   ;;  %s158_s29 = sadd.s32 1, %s764_s25 }
   0x7   : > { %s155_s30 = ssub.s32 %s768_s26, %s836_s28  ;;  %p168_p0 = scmp.ne.s32.totalorder %s764_s25, %s760_s24 }
   0x8   : > { %p156_p1 = scmp.eq.s32.totalorder %s155_s30, 0  ;;  %p169_p2 = scmp.eq.s32.totalorder %s832_s0, 1 }
   0x9   : > { %p174_p3 = scmp.ne.s32.totalorder %s760_s24, %s756_s23  ;;  %p175_p4 = scmp.eq.s32.totalorder %s585_s27, 1 }
   0xa   : > { %s847_s7 = scalar_select %p156_p1, %s764_s25, %s158_s29  }
   0xb   : > { %p849_p5 = por %p169_p2, %p168_p0  ;;  %p853_p6 = por %p175_p4, %p174_p3 }
   0xc   : > { %p588_p7 = scmp.ge.s32.totalorder %s768_s26, 1  ;;  %p217_p8 = scmp.lt.s32.totalorder %s768_s26, 3 }
   0xe   : > { %p218_p9 = pnand %p588_p7, %p217_p8 }
   0xf   : > { %v262_v0 = vld [vmem:[%s946_s2] sm:$0x3] (!%p218_p9)  ;;  %vm278_vm0 = vcmask (!%p218_p9), 1041408   ;;  %s590_s12 = sshll.u32 (!%p218_p9), %s832_s0, 2  ;;  %vm271_vm1 = vcmask (!%p218_p9), 31744   ;;  %v687_v9 = vld [vmem:[%s947_s3 + $0x8] sm:$0xff] (!%p218_p9)   ;;  %v267_v10 = vlaneseq (!%p218_p9) }
  0x10   : > { %221 = sbr.rel (%p218_p9) target bundleno = 726 (0x2d6), region = 44  ;;  %644 = vmatprep.subr.msk.bf16.mxu0 (!%p218_p9), %vm278_vm0, %v262_v0  ;;  %v280_v1 = vsel (!%p218_p9), %vm278_vm0, %v262_v0, 0  ;;  %p248_p10 = scmp.lt.s32.totalorder (!%p218_p9), %s590_s12, 7  ;;  %v686_v8 = vld [vmem:[%s947_s3] sm:$0xff] (!%p218_p9)   ;;  %vm367_vm2 = vcmask (!%p218_p9), 261120   ;;  %v689_v38 = vld [vmem:[%s948_s4 + $0x8] sm:$0xff] (!%p218_p9)  }
  0x11   : > { %623 = vmatpush3.bf16.msra.mxu0 (!%p218_p9), %v280_v1  ;;  %628 = vmatprep.subr.bf16.mxu1 (!%p218_p9), %v686_v8  ;;  %s255_s21 = sld [smem:[#allocation2]] (!%p218_p9)  ;;  %v263_v11 = vld [vmem:[%s946_s2] sm:$0x4] (!%p218_p9)  ;;  %v268_v13 = vshrl.u32 (!%p218_p9), %v267_v10, 7  ;;  %v594_v19 = vld [vmem:[%s949_s5] ss:$0 sm:$0xff] (!%p218_p9) }
  0x12   : > { %629 = vmatpush3.bf16.msra.mxu1 (!%p218_p9), %v686_v8  ;;  %v264_v12 = vunpack.c.l.bf16 (!%p218_p9), %v263_v11  ;;  %v688_v37 = vld [vmem:[%s948_s4] sm:$0xff] (!%p218_p9)   ;;  %s610_s22 = sshll.u32 (!%p218_p9), %s832_s0, 9  ;;  %s770_s11 = smov (!%p218_p9), [#allocation3]  }
  0x13   : > { %630 = vmatprep.subr.bf16.mxu1 (!%p218_p9), %v687_v9  ;;  %v269_v16 = vsub.s32 (!%p218_p9), 4, %v268_v13  ;;  %636 = vmatprep.subr.bf16.mxu0 (!%p218_p9), %v688_v37  ;;  %v595_v39 = vld [vmem:[%s949_s5 + $0x1] ss:$0 sm:$0xff] (!%p218_p9)  ;;  %v600_v54 = vld [vmem:[%s949_s5 + $0x2] ss:$0 sm:$0xff] (!%p218_p9)  ;;  %s901_s30 = scalar_lea.hbm (!%p218_p9), %s950_s6, %s610_s22 }
  0x16   : > { %631 = vmatpush3.bf16.msra.mxu1 (!%p218_p9), %v687_v9 }
  0x17   : > { %s958_s12 = smov (!%p248_p10, %s590_s12), 7  ;;  %v265_v14 = vstv %s255_s21 }
  0x18   : > { %s591_s13 = sshll.u32 %s958_s12, 3  ;;  %v266_v15 = vmul.f32 %v265_v14, %v264_v12  ;;  %s710_s12 = sshll.u32 %s770_s11, 4  ;;  %s711_s12 = int_to_ptr.vmem [resolvable:$false] %s710_s12 }
  0x19   : > { %s251_s16 = scalar_lea.vmem %s945_s1, %s591_s13  ;;  %s712_s13 = scalar_lea.vmem %s711_s12, 1024 }
  0x1a   : > { %v256_v2 = vld [vmem:[%s251_s16] sm:$0xff]  ;;  %v257_v3 = vld [vmem:[%s251_s16 + $0x8] sm:$0xff]  ;;  %v258_v4 = vld [vmem:[%s251_s16 + $0x10] sm:$0xff]  ;;  %v270_v17 = vrot.slane %v266_v15, %v269_v16 }
  0x1b   : > { %v260_v5 = vpack.c.bf16 %v257_v3, %v256_v2  ;;  %v259_v6 = vld [vmem:[%s251_s16 + $0x18] sm:$0xff]  ;;  %s244_s16 = sand.u32 1, %s760_s24  }
  0x1c   : > { %v261_v7 = vpack.c.bf16 %v259_v6, %v258_v4  ;;  %s589_s17 = sshll.u32 %s244_s16, 5  ;;  %s903_s0 = scalar_lea.sflag [#allocation4], %s244_s16 }
  0x1d   : > { %624 = vmatprep.mubr.msk.bf16.mxu0 %vm271_vm1, %v260_v5  ;;  %s246_s20 = scalar_lea.vmem [#allocation3], %s589_s17 }
  0x1e   : > { %625 = vmatmul.mubr.msk.bf16.vlgmr.msra.gmra.mrb[0].mxu0 %vm271_vm1, %v261_v7  ;;  %s523_s21 = sshll.u32 %s246_s20, 4  ;;  %s896_s21 = int_to_ptr.vmem [resolvable:$true] %s523_s21 }
  0x1f   : > { %637 = vmatpush3.bf16.msra.mxu0 %v688_v37  ;;  %s706_s10 = scalar_lea.vmem %s896_s21, 512  ;;  %p713_p0 = scmp.lt.s32.totalorder %s896_s21, %s711_s12 }
  0x20   : > { %638 = vmatprep.subr.bf16.mxu0 %v689_v38  ;;  %p707_p11 = scmp.ne.s32.totalorder %s896_s21, %s706_s10  ;;  %p714_p1 = scmp.lt.s32.totalorder %s712_s13, %s706_s10 }
  0x22   : > { %p708_p12 = pnand %p707_p11, %p849_p5  ;;  %p715_p2 = por %p714_p1, %p713_p0 }
  0x23   : > { %639 = vmatpush3.bf16.msra.mxu0 %v689_v38 }
  0x24   : > { %p709_p13 = pneg %p708_p12 }
  0x26   : > { %p716_p3 = pnand %p715_p2, %p709_p13 }
  0xf1   : > { %v626_v18 = vpop.f32.mrb[0].mxu0 }
  0xf2   : > { %v325_v20 = vadd.f32 %v626_v18, %v270_v17  ;;  %v316_v21 = vpop.f32.mrb[1].mxu0 }
  0xf3   : > { %v317_v22 = vadd.f32 %v316_v21, %v270_v17  ;;  %v627_v23 = vpop.f32.mrb[2].mxu0 }
  0xf4   : > { %v338_v24 = vadd.f32 %v594_v19, %v325_v20  ;;  %v328_v25 = vadd.f32 %v627_v23, %v270_v17  ;;  %v319_v26 = vpop.f32.mrb[3].mxu0 }
  0xf5   : > { %v336_v27 = vadd.f32 %v594_v19, %v317_v22  ;;  %v320_v28 = vadd.f32 %v319_v26, %v270_v17 }
  0xf6   : > { %690 = vtanh.f32 %v338_v24  ;;  %v339_v29 = vadd.f32 %v594_v19, %v328_v25 }
  0xf7   : > { %692 = vtanh.f32 %v336_v27  ;;  %v337_v30 = vadd.f32 %v594_v19, %v320_v28 }
  0xf8   : > { %694 = vtanh.f32 %v339_v29 }
  0xf9   : > { %696 = vtanh.f32 %v337_v30 }
 0x100   : > { %v691_v31 = vpop.eup %690 }
 0x101   : > { %v693_v32 = vpop.eup %692 }
 0x102   : > { %v695_v33 = vpop.eup %694 }
 0x103   : > { %v697_v34 = vpop.eup %696  ;;  %v350_v35 = vpack.c.bf16 %v695_v33, %v691_v31 }
 0x104   : > { %v349_v36 = vpack.c.bf16 %v697_v34, %v693_v32 }
 0x106   : > { %632 = vmatprep.mubr.msk.bf16.mxu1 %vm367_vm2, %v349_v36 }
 0x107   : > { %633 = vmatmul.mubr.msk.bf16.vlgmr.msra.gmra.mrb[0].mxu1 %vm367_vm2, %v350_v35 }
 0x1da   : > { %v634_v40 = vpop.f32.mrb[0].mxu1 }
 0x1db   : > { %v417_v41 = vadd.f32 %v634_v40, %v595_v39  ;;  %v408_v42 = vpop.f32.mrb[1].mxu1 }
 0x1dc   : > { %v409_v43 = vadd.f32 %v595_v39, %v408_v42  ;;  %v635_v44 = vpop.f32.mrb[2].mxu1 }
 0x1dd   : > { %698 = vtanh.f32 %v417_v41  ;;  %v420_v45 = vadd.f32 %v635_v44, %v595_v39  ;;  %v411_v46 = vpop.f32.mrb[3].mxu1 }
 0x1de   : > { %700 = vtanh.f32 %v409_v43  ;;  %v412_v47 = vadd.f32 %v595_v39, %v411_v46 }
 0x1df   : > { %702 = vtanh.f32 %v420_v45 }
 0x1e0   : > { %704 = vtanh.f32 %v412_v47 }
 0x1e7   : > { %v699_v48 = vpop.eup %698 }
 0x1e8   : > { %v701_v49 = vpop.eup %700 }
 0x1e9   : > { %v703_v50 = vpop.eup %702 }
 0x1ea   : > { %v705_v51 = vpop.eup %704  ;;  %v428_v52 = vpack.c.bf16 %v703_v50, %v699_v48 }
 0x1eb   : > { %v427_v53 = vpack.c.bf16 %v705_v51, %v701_v49 }
 0x1ed   : > { %640 = vmatprep.mubr.msk.bf16.mxu0 %vm367_vm2, %v427_v53 }
 0x1ee   : > { %641 = vmatmul.mubr.msk.bf16.vlgmr.msra.gmra.mrb[4].mxu0 %vm367_vm2, %v428_v52 }
 0x2c1   : > { %v642_v55 = vpop.f32.mrb[4].mxu0 }
 0x2c2   : > { %v499_v56 = vadd.f32 %v642_v55, %v600_v54  ;;  %v490_v57 = vpop.f32.mrb[5].mxu0 }
 0x2c3   : > { %v491_v58 = vadd.f32 %v600_v54, %v490_v57  ;;  %v643_v59 = vpop.f32.mrb[6].mxu0 }
 0x2c4   : > { %507 = vst [vmem:[%s246_s20 + $0x10] sm:$0xff] %v499_v56  ;;  %v502_v60 = vadd.f32 %v643_v59, %v600_v54  ;;  %v493_v61 = vpop.f32.mrb[7].mxu0 }
 0x2c5   : > { %505 = vst [vmem:[%s246_s20] sm:$0xff] %v491_v58  ;;  %v494_v62 = vadd.f32 %v600_v54, %v493_v61 }
 0x2c6   : > { %508 = vst [vmem:[%s246_s20 + $0x18] sm:$0xff] %v502_v60 }
 0x2c7   : > { %506 = vst [vmem:[%s246_s20 + $0x8] sm:$0xff] %v494_v62 }
 0x2c8   : > { %719 = shalt.err (!%p716_p3)
}
 0x2c9   : > { %s720_s14 = scalar_lea.hbm %s901_s30, 512  ;;  %s724_s17 = scalar_lea.hbm %s950_s6, 1024 }
 0x2ca   : > { %p721_p4 = scmp.ne.s32.totalorder %s901_s30, %s720_s14  ;;  %p725_p9 = scmp.lt.u32.totalorder %s901_s30, %s950_s6 }
 0x2cb   : > { %p726_p10 = scmp.lt.u32.totalorder %s724_s17, %s720_s14  ;;  %p728_p12 = scmp.lt.u32.totalorder %s720_s14, %s901_s30 }
 0x2cc   : > { %p722_p7 = pnand %p721_p4, %p849_p5 }
 0x2cd   : > { %p727_p11 = por %p726_p10, %p725_p9 }
 0x2ce   : > { %p723_p8 = pneg %p722_p7 }
 0x2cf   : > { %p729_p13 = por %p728_p12, %p727_p11 }
 0x2d1   : > { %p730_p0 = pnand %p729_p13, %p723_p8 }
 0x2d3   : > { %733 = shalt.err (!%p730_p0)
}
 0x2d4   : > { %s771_s20 = smov 128   ;;  %s772_s22 = smov 8  }
 0x2d5   : > { %645 = dma.vmem_to_hbm [thread:$0]  (%p849_p5), %s896_s21, 512, %s901_s30, %s903_s0, %s771_s20, %s771_s20, %s772_s22  }
 0x2d6 PF: > { %p651_p1 = scmp.ge.s32.totalorder %s768_s26, 2  ;;  %s538_s27 = sand.u32 1, %s756_s23  }
 0x2d7   : > { %s539_s29 = scalar_lea.sflag [#allocation4], %s538_s27 }
 0x2d8   : > { %p648_p2 = pnand %p651_p1, %p853_p6 }
 0x2da   : > { %751 = dma.done.wait (!%p648_p2), %s539_s29, 512  }
 0x2db   : > { %753 = vsyncadd (!%p648_p2), %s539_s29, 4294966784  ;;  %p17_p3 = scmp.ge.s32.totalorder %s836_s28, 4   ;;  %s953_s23 = smov %s760_s24 }
 0x2dc   : > { %s954_s24 = smov %s764_s25  ;;  %s955_s25 = smov %s847_s7 }
 0x2dd   : > { %s956_s26 = smov %s836_s28  ;;  %19 = sbr.rel (!%p17_p3) target bundleno = 5 (0x5), region = 79 }
 0x2e4   :  { %544 = vsyncpa [#allocation4], 1 }
 0x2e5   :  { %546 = vsyncpa [#allocation4 + $0x1], 1 }

</bundles_post_ra>
